<compile_context>
chip_gen: v6e
topology: v6e:2x2x1
jax: 0.10.0
libtpu: 0.0.40
codegen_flags: <defaults>
</compile_context>

<pallas_src>
import jax
import jax.numpy as jnp
from jax.experimental import pallas as pl
from jax.experimental.pallas import tpu as pltpu


# ---- slab layout (rows, all widths padded to 128 lanes) --------------------
#   rows   0:8    W1p  (8,   128)   real: [:, :64]
#   row    8      b1p  (1,   128)   real: [:64]
#   rows  16:144  Whp  (128, 128)   real: [:64, :64]
#   row   144     bhp  (1,   128)   real: [:64]
#   rows 152:280  W2p  (128, 128)   real: [:64, :num_classes]
#   row   280     b2p  (1,   128)   real: [:num_classes]
SLAB_ROWS = 288
PAD = 128


def policy_kernel(x_ref, slab_ref, out_ref):
    x = x_ref[...]                       # (B, 8)

    w1 = slab_ref[0:8, :]                # (8, 128)
    b1 = slab_ref[8:9, :]                # (1, 128)
    wh = slab_ref[16:144, :]             # (128, 128)
    bh = slab_ref[144:145, :]            # (1, 128)
    w2 = slab_ref[152:280, :]            # (128, 128)
    b2 = slab_ref[280:281, :]            # (1, 128)

    # fc1 + tanh
    h = jnp.tanh(jnp.dot(x, w1, preferred_element_type=jnp.float32) + b1)
    # hidden + tanh (applied twice with the SAME weights, as in the module)
    h = jnp.tanh(jnp.dot(h, wh, preferred_element_type=jnp.float32) + bh)
    h = jnp.tanh(jnp.dot(h, wh, preferred_element_type=jnp.float32) + bh)
    # fc2 + tanh -- lane-dense (B, 128) store; real outputs in cols [:nc]
    out_ref[...] = jnp.tanh(
        jnp.dot(h, w2, preferred_element_type=jnp.float32) + b2)


def pack_params(params, num_classes):
    """Build the padded weight slab ONCE (outside the per-step hot path)."""
    slab = jnp.zeros((SLAB_ROWS, PAD), dtype=jnp.float32)
    slab = slab.at[0:8, 0:64].set(params["w1"])
    slab = slab.at[8, 0:64].set(params["b1"].reshape(64))
    slab = slab.at[16:80, 0:64].set(params["wh"])
    slab = slab.at[144, 0:64].set(params["bh"].reshape(64))
    slab = slab.at[152:216, 0:num_classes].set(params["w2"])
    slab = slab.at[280, 0:num_classes].set(params["b2"].reshape(num_classes))
    return slab


def policy_forward(x, slab, sigma_param, num_classes):
    """x: (B, 8) f32; slab: packed weights; returns (out (B, nc), sigma (2,2))."""
    B = x.shape[0]

    out_padded = pl.pallas_call(
        policy_kernel,
        out_shape=jax.ShapeDtypeStruct((B, PAD), jnp.float32),
        in_specs=[
            pl.BlockSpec(memory_space=pltpu.MemorySpace.VMEM),  # x
            pl.BlockSpec(memory_space=pltpu.MemorySpace.VMEM),  # weight slab
        ],
        out_specs=pl.BlockSpec(memory_space=pltpu.MemorySpace.VMEM),
    )(x, slab)

    out = out_padded[:, :num_classes]
    # sigma = relu(sigma) + 0.001 * I  -- tiny, fused by XLA; kept out of kernel.
    sigma = jnp.maximum(sigma_param, 0.0) + 0.001 * jnp.eye(2, dtype=jnp.float32)
    return out, sigma


def init_params(key, num_classes):
    """Deterministic PyTorch-nn.Linear-style uniform init, (in, out) layout."""
    def linear(k, fan_in, fan_out):
        kw, kb = jax.random.split(k)
        bound = 1.0 / jnp.sqrt(fan_in)
        w = jax.random.uniform(kw, (fan_in, fan_out), jnp.float32, -bound, bound)
        b = jax.random.uniform(kb, (1, fan_out), jnp.float32, -bound, bound)
        return w, b

    k1, k2, k3 = jax.random.split(key, 3)
    w1, b1 = linear(k1, 8, 64)
    wh, bh = linear(k2, 64, 64)
    w2, b2 = linear(k3, 64, num_classes)
    sigma = jnp.array([[0.1, 0.0], [0.0, 0.1]], dtype=jnp.float32)
    return {"w1": w1, "b1": b1, "wh": wh, "bh": bh,
            "w2": w2, "b2": b2, "sigma": sigma}


def reference_forward(x, params):
    h = jnp.tanh(x @ params["w1"] + params["b1"])
    h = jnp.tanh(h @ params["wh"] + params["bh"])
    h = jnp.tanh(h @ params["wh"] + params["bh"])
    out = jnp.tanh(h @ params["w2"] + params["b2"])
    sigma = jnp.maximum(params["sigma"], 0.0) + 0.001 * jnp.eye(2, dtype=jnp.float32)
    return out, sigma


if __name__ == "__main__":
    key = jax.random.PRNGKey(0)
    kx, kp = jax.random.split(key)

    num_classes = 2   # 2-D Gaussian policy mean (matches the 2x2 sigma)
    B = 8             # small batch of environment observations

    x = jax.random.normal(kx, (B, 8), dtype=jnp.float32)
    params = init_params(kp, num_classes)
    slab = pack_params(params, num_classes)      # built once, outside hot path

    out, sigma = policy_forward(x, slab, params["sigma"], num_classes)
    out = jax.block_until_ready(out)
    sigma = jax.block_until_ready(sigma)

    ref_out, ref_sigma = reference_forward(x, params)
    assert out.shape == (B, num_classes) and sigma.shape == (2, 2)
    assert jnp.allclose(out, ref_out, atol=1e-5), "MLP output mismatch"
    assert jnp.allclose(sigma, ref_sigma, atol=1e-6), "sigma mismatch"

    print("KERNEL_OK")
</pallas_src>

<mosaic_0001>
module attributes {stable_mosaic.version = 11 : i64} {
  func.func @policy_kernel(%arg0: memref<8x8xf32, #tpu.memory_space<vmem>>, %arg1: memref<288x128xf32, #tpu.memory_space<vmem>>, %arg2: memref<8x128xf32, #tpu.memory_space<vmem>>) attributes {dimension_semantics = [], scalar_prefetch = 0 : i64, scratch_operands = 0 : i64, tpu.core_type = #tpu.core_type<tc>} {
    %c0 = arith.constant 0 : index
    %c0_0 = arith.constant 0 : index
    %0 = vector.load %arg0[%c0, %c0_0] : memref<8x8xf32, #tpu.memory_space<vmem>>, vector<8x8xf32>
    %c0_1 = arith.constant 0 : index
    %c0_2 = arith.constant 0 : index
    %1 = vector.load %arg1[%c0_1, %c0_2] : memref<288x128xf32, #tpu.memory_space<vmem>>, vector<8x128xf32>
    %c8 = arith.constant 8 : index
    %c0_3 = arith.constant 0 : index
    %2 = vector.load %arg1[%c8, %c0_3] : memref<288x128xf32, #tpu.memory_space<vmem>>, vector<1x128xf32>
    %c16 = arith.constant 16 : index
    %c0_4 = arith.constant 0 : index
    %3 = vector.load %arg1[%c16, %c0_4] : memref<288x128xf32, #tpu.memory_space<vmem>>, vector<128x128xf32>
    %c144 = arith.constant 144 : index
    %c0_5 = arith.constant 0 : index
    %4 = vector.load %arg1[%c144, %c0_5] : memref<288x128xf32, #tpu.memory_space<vmem>>, vector<1x128xf32>
    %c152 = arith.constant 152 : index
    %c0_6 = arith.constant 0 : index
    %5 = vector.load %arg1[%c152, %c0_6] : memref<288x128xf32, #tpu.memory_space<vmem>>, vector<128x128xf32>
    %c280 = arith.constant 280 : index
    %c0_7 = arith.constant 0 : index
    %6 = vector.load %arg1[%c280, %c0_7] : memref<288x128xf32, #tpu.memory_space<vmem>>, vector<1x128xf32>
    %cst = arith.constant dense<0.000000e+00> : vector<8x128xf32>
    %7 = tpu.matmul %0, %1, %cst {dimension_numbers = #tpu.dot_dimension_numbers<[1], [0], [0], [1], [0, 0, 1, 1], [], []>} : vector<8x8xf32>, vector<8x128xf32>, vector<8x128xf32> -> vector<8x128xf32>
    %8 = vector.broadcast %2 : vector<1x128xf32> to vector<8x128xf32>
    %9 = arith.addf %7, %8 : vector<8x128xf32>
    %10 = math.tanh %9 : vector<8x128xf32>
    %cst_8 = arith.constant dense<0.000000e+00> : vector<8x128xf32>
    %11 = tpu.matmul %10, %3, %cst_8 {dimension_numbers = #tpu.dot_dimension_numbers<[1], [0], [0], [1], [0, 0, 1, 1], [], []>} : vector<8x128xf32>, vector<128x128xf32>, vector<8x128xf32> -> vector<8x128xf32>
    %12 = vector.broadcast %4 : vector<1x128xf32> to vector<8x128xf32>
    %13 = arith.addf %11, %12 : vector<8x128xf32>
    %14 = math.tanh %13 : vector<8x128xf32>
    %cst_9 = arith.constant dense<0.000000e+00> : vector<8x128xf32>
    %15 = tpu.matmul %14, %3, %cst_9 {dimension_numbers = #tpu.dot_dimension_numbers<[1], [0], [0], [1], [0, 0, 1, 1], [], []>} : vector<8x128xf32>, vector<128x128xf32>, vector<8x128xf32> -> vector<8x128xf32>
    %16 = vector.broadcast %4 : vector<1x128xf32> to vector<8x128xf32>
    %17 = arith.addf %15, %16 : vector<8x128xf32>
    %18 = math.tanh %17 : vector<8x128xf32>
    %cst_10 = arith.constant dense<0.000000e+00> : vector<8x128xf32>
    %19 = tpu.matmul %18, %5, %cst_10 {dimension_numbers = #tpu.dot_dimension_numbers<[1], [0], [0], [1], [0, 0, 1, 1], [], []>} : vector<8x128xf32>, vector<128x128xf32>, vector<8x128xf32> -> vector<8x128xf32>
    %20 = vector.broadcast %6 : vector<1x128xf32> to vector<8x128xf32>
    %21 = arith.addf %19, %20 : vector<8x128xf32>
    %22 = math.tanh %21 : vector<8x128xf32>
    %c0_11 = arith.constant 0 : index
    %c0_12 = arith.constant 0 : index
    %23 = vector.load %arg2[%c0_11, %c0_12] : memref<8x128xf32, #tpu.memory_space<vmem>>, vector<8x128xf32>
    tpu.vector_store %arg2[%c0_11, %c0_12], %22 {strides = array<i32>} : memref<8x128xf32, #tpu.memory_space<vmem>>, vector<8x128xf32>,
    return
  }
}

</mosaic_0001>

<bundles_post_ra>
// kernel: tpu_custom_call.1
= control target key start
LH: loop header
LB: loop body
LE: loop exit
PB: predicated region body
PF: predicated region fallthrough
CT: control target
= control target key end

     0   :  { %7 = vsyncpa [#allocation3], 0  ;;  %s728_s0 = inlined_call_operand.hbm [shape: f32[8,8], index: 0, kind: input, shape index: {}]   ;;  %s729_s1 = inlined_call_operand.hbm [shape: f32[288,128], index: 1, kind: input, shape index: {}]   ;;  %s730_s2 = inlined_call_operand.hbm [shape: f32[8,128], index: 2, kind: output, shape index: {}]  }
   0x1   :  { %8 = vsyncpa [#allocation6], 0 }
   0x2   :  { %9 = vsyncpa [#allocation4], 0  ;;  %s640_s9 = smov [#allocation2]   ;;  %s641_s11 = smov [#allocation5]  }
   0x3   :  { %s16_s10 = sshll.u32 %s640_s9, 4  ;;  %s25_s12 = sshll.u32 %s641_s11, 4  ;;  %s17_s10 = int_to_ptr.vmem [resolvable:$true] %s16_s10  ;;  %s26_s12 = int_to_ptr.vmem [resolvable:$true] %s25_s12 }
   0x4   :  { %s582_s13 = scalar_lea.vmem %s17_s10, 128  ;;  %p587_p1 = scmp.lt.s32.totalorder %s17_s10, %s17_s10 }
   0x5   :  { %p583_p0 = scmp.ne.s32.totalorder %s17_s10, %s582_s13  ;;  %p588_p2 = scmp.lt.s32.totalorder %s582_s13, %s582_s13 }
   0x7   :  { %p589_p3 = por %p588_p2, %p587_p1 }
   0x9   :  { %p590_p4 = pnand %p589_p3, %p583_p0 }
   0xb   :  { %593 = shalt.err (!%p590_p4)
}
   0xc   :  { %19 = dma.hbm_to_vmem [thread:$0]  %s728_s0, 128, %s17_s10, [#allocation3]  }
   0xd   :  { %s602_s16 = scalar_lea.vmem %s26_s12, 4608  ;;  %p607_p6 = scmp.lt.s32.totalorder %s26_s12, %s26_s12 }
   0xe   :  { %p603_p5 = scmp.ne.s32.totalorder %s26_s12, %s602_s16  ;;  %p608_p7 = scmp.lt.s32.totalorder %s602_s16, %s602_s16 }
  0x10   :  { %p609_p8 = por %p608_p7, %p607_p6 }
  0x12   :  { %p610_p9 = pnand %p609_p8, %p603_p5 }
  0x14   :  { %613 = shalt.err (!%p610_p9)
}
  0x15   :  { %s642_s17 = smov 128   ;;  %s643_s18 = smov 8  }
  0x16   :  { %31 = dma.hbm_to_vmem [thread:$0]  %s729_s1, 4608, %s26_s12, [#allocation6], %s642_s17, %s642_s17, %s643_s18  }
  0x17   :  { %634 = dma.done.wait [#allocation3], 128  }
  0x18   :  { %635 = vsyncadd [#allocation3], 4294967168 }
  0x19   :  { %636 = dma.done.wait [#allocation6], 4608  }
  0x1a   :  { %637 = vsyncadd [#allocation6], 4294962688  ;;  %v644_v0 = vmov 0.0   ;;  %vm645_vm0 = vmmov 0   ;;  %vm79_vm1 = vcmask 64512   ;;  %v39_v1 = vld [vmem:[#allocation5] sm:$0xff] }
  0x1b   :  { %449 = vmatprep.subr.mxu0 %v644_v0  ;;  %451 = vmatprep.mubr.msk.f32.mxu0 %vm645_vm0, %v644_v0  ;;  %v38_v2 = vld [vmem:[#allocation2] sm:$0xff]  ;;  %v56_v3 = vld [vmem:[#allocation5 + $0x88] sm:$0xff]  ;;  %v55_v4 = vld [vmem:[#allocation5 + $0x80] sm:$0xff]  ;;  %s646_s0 = smov [#allocation7]  }
  0x1c   :  { %454 = vmatprep.subr.mxu1 %v644_v0  ;;  %486 = vmatprep.mubr.msk.f32.mxu1 %vm645_vm0, %v644_v0  ;;  %v54_v5 = vld [vmem:[#allocation5 + $0x78] sm:$0xff]  ;;  %v53_v6 = vld [vmem:[#allocation5 + $0x70] sm:$0xff]  ;;  %v52_v7 = vld [vmem:[#allocation5 + $0x68] sm:$0xff]  ;;  %s382_s1 = sshll.u32 %s646_s0, 4  ;;  %s383_s1 = int_to_ptr.vmem [resolvable:$true] %s382_s1 }
  0x1d   :  { %450 = vmatpush3.msra.mxu0 %v39_v1  ;;  %455 = vmatpush3.msra.mxu1 %v56_v3  ;;  %v51_v8 = vld [vmem:[#allocation5 + $0x60] sm:$0xff]  ;;  %v50_v9 = vld [vmem:[#allocation5 + $0x58] sm:$0xff]  ;;  %v49_v10 = vld [vmem:[#allocation5 + $0x50] sm:$0xff]  ;;  %s614_s21 = scalar_lea.vmem %s383_s1, 128  ;;  %p619_p11 = scmp.lt.s32.totalorder %s383_s1, %s383_s1 }
  0x1e   :  { %452 = vmatmul.mubr.msk.f32.vlgmr.msra.gmra.mxu0 %vm79_vm1, %v38_v2  ;;  %456 = vmatprep.subr.mxu1 %v644_v0  ;;  %v48_v11 = vld [vmem:[#allocation5 + $0x48] sm:$0xff]  ;;  %v47_v12 = vld [vmem:[#allocation5 + $0x40] sm:$0xff]  ;;  %v46_v13 = vld [vmem:[#allocation5 + $0x38] sm:$0xff]  ;;  %p615_p10 = scmp.ne.s32.totalorder %s383_s1, %s614_s21  ;;  %p620_p12 = scmp.lt.s32.totalorder %s614_s21, %s614_s21 }
  0x1f   :  { %457 = vmatpush3.msra.mxu1 %v55_v4  ;;  %489 = vmatprep.subr.mxu0 %v644_v0  ;;  %v45_v14 = vld [vmem:[#allocation5 + $0x30] sm:$0xff]  ;;  %v44_v15 = vld [vmem:[#allocation5 + $0x28] sm:$0xff]  ;;  %v43_v16 = vld [vmem:[#allocation5 + $0x20] sm:$0xff] }
  0x20   :  { %458 = vmatprep.subr.mxu1 %v644_v0  ;;  %490 = vmatpush3.msra.mxu0 %v56_v3  ;;  %v42_v17 = vld [vmem:[#allocation5 + $0x18] sm:$0xff]  ;;  %v41_v18 = vld [vmem:[#allocation5 + $0x10] sm:$0xff]  ;;  %v392_v19 = vld [vmem:[#allocation5 + $0x8] ss:$0 sm:$0xff]  ;;  %p621_p13 = por %p620_p12, %p619_p11 }
  0x21   :  { %459 = vmatpush3.msra.mxu1 %v54_v5  ;;  %491 = vmatprep.subr.mxu0 %v644_v0  ;;  %v73_v24 = vld [vmem:[#allocation5 + $0x110] sm:$0xff]  ;;  %v72_v25 = vld [vmem:[#allocation5 + $0x108] sm:$0xff]  ;;  %v71_v26 = vld [vmem:[#allocation5 + $0x100] sm:$0xff] }
  0x22   :  { %460 = vmatprep.subr.mxu1 %v644_v0  ;;  %492 = vmatpush3.msra.mxu0 %v55_v4  ;;  %v70_v27 = vld [vmem:[#allocation5 + $0xf8] sm:$0xff]  ;;  %v69_v28 = vld [vmem:[#allocation5 + $0xf0] sm:$0xff]  ;;  %v68_v29 = vld [vmem:[#allocation5 + $0xe8] sm:$0xff]  ;;  %p622_p0 = pnand %p621_p13, %p615_p10 }
  0x23   :  { %461 = vmatpush3.msra.mxu1 %v53_v6  ;;  %493 = vmatprep.subr.mxu0 %v644_v0  ;;  %v67_v30 = vld [vmem:[#allocation5 + $0xe0] sm:$0xff]  ;;  %v394_v31 = vld [vmem:[#allocation5 + $0x90] ss:$0 sm:$0xff]  ;;  %v66_v36 = vld [vmem:[#allocation5 + $0xd8] sm:$0xff] }
  0x24   :  { %462 = vmatprep.subr.mxu1 %v644_v0  ;;  %494 = vmatpush3.msra.mxu0 %v54_v5  ;;  %v65_v37 = vld [vmem:[#allocation5 + $0xd0] sm:$0xff]  ;;  %v64_v38 = vld [vmem:[#allocation5 + $0xc8] sm:$0xff]  ;;  %v63_v39 = vld [vmem:[#allocation5 + $0xc0] sm:$0xff] }
  0x25   :  { %463 = vmatpush3.msra.mxu1 %v52_v7  ;;  %495 = vmatprep.subr.mxu0 %v644_v0  ;;  %v62_v40 = vld [vmem:[#allocation5 + $0xb8] sm:$0xff]  ;;  %v61_v41 = vld [vmem:[#allocation5 + $0xb0] sm:$0xff]  ;;  %v60_v42 = vld [vmem:[#allocation5 + $0xa8] sm:$0xff] }
  0x26   :  { %464 = vmatprep.subr.mxu1 %v644_v0  ;;  %496 = vmatpush3.msra.mxu0 %v53_v6  ;;  %v59_v43 = vld [vmem:[#allocation5 + $0xa0] sm:$0xff]  ;;  %v58_v44 = vld [vmem:[#allocation5 + $0x98] sm:$0xff] }
  0x27   :  { %465 = vmatpush3.msra.mxu1 %v51_v8  ;;  %497 = vmatprep.subr.mxu0 %v644_v0  ;;  %v395_v49 = vld [vmem:[#allocation5 + $0x118] ss:$0 sm:$0xff] }
  0x28   :  { %466 = vmatprep.subr.mxu1 %v644_v0  ;;  %498 = vmatpush3.msra.mxu0 %v52_v7 }
  0x29   :  { %467 = vmatpush3.msra.mxu1 %v50_v9  ;;  %499 = vmatprep.subr.mxu0 %v644_v0 }
  0x2a   :  { %468 = vmatprep.subr.mxu1 %v644_v0  ;;  %500 = vmatpush3.msra.mxu0 %v51_v8 }
  0x2b   :  { %501 = vmatprep.subr.mxu0 %v644_v0  ;;  %521 = vmatprep.mubr.msk.f32.mxu0 %vm645_vm0, %v644_v0 }
  0x2c   :  { %502 = vmatpush3.msra.mxu0 %v50_v9  ;;  %469 = vmatpush3.msra.mxu1 %v49_v10 }
  0x2d   :  { %503 = vmatprep.subr.mxu0 %v644_v0  ;;  %470 = vmatprep.subr.mxu1 %v644_v0 }
  0x2e   :  { %504 = vmatpush3.msra.mxu0 %v49_v10  ;;  %471 = vmatpush3.msra.mxu1 %v48_v11 }
  0x2f   :  { %505 = vmatprep.subr.mxu0 %v644_v0  ;;  %472 = vmatprep.subr.mxu1 %v644_v0 }
  0x30   :  { %506 = vmatpush3.msra.mxu0 %v48_v11  ;;  %473 = vmatpush3.msra.mxu1 %v47_v12 }
  0x31   :  { %507 = vmatprep.subr.mxu0 %v644_v0  ;;  %474 = vmatprep.subr.mxu1 %v644_v0 }
  0x32   :  { %508 = vmatpush3.msra.mxu0 %v47_v12  ;;  %475 = vmatpush3.msra.mxu1 %v46_v13 }
  0x33   :  { %509 = vmatprep.subr.mxu0 %v644_v0  ;;  %476 = vmatprep.subr.mxu1 %v644_v0 }
  0x34   :  { %510 = vmatpush3.msra.mxu0 %v46_v13  ;;  %477 = vmatpush3.msra.mxu1 %v45_v14 }
  0x35   :  { %511 = vmatprep.subr.mxu0 %v644_v0  ;;  %478 = vmatprep.subr.mxu1 %v644_v0 }
  0x36   :  { %512 = vmatpush3.msra.mxu0 %v45_v14  ;;  %479 = vmatpush3.msra.mxu1 %v44_v15 }
  0x37   :  { %513 = vmatprep.subr.mxu0 %v644_v0  ;;  %480 = vmatprep.subr.mxu1 %v644_v0 }
  0x38   :  { %514 = vmatpush3.msra.mxu0 %v44_v15  ;;  %481 = vmatpush3.msra.mxu1 %v43_v16 }
  0x39   :  { %515 = vmatprep.subr.mxu0 %v644_v0  ;;  %482 = vmatprep.subr.mxu1 %v644_v0 }
  0x3a   :  { %516 = vmatpush3.msra.mxu0 %v43_v16  ;;  %483 = vmatpush3.msra.mxu1 %v42_v17 }
  0x3b   :  { %517 = vmatprep.subr.mxu0 %v644_v0  ;;  %484 = vmatprep.subr.mxu1 %v644_v0 }
  0x3c   :  { %518 = vmatpush3.msra.mxu0 %v42_v17  ;;  %485 = vmatpush3.msra.mxu1 %v41_v18 }
  0x3d   :  { %519 = vmatprep.subr.mxu0 %v644_v0  ;;  %524 = vmatprep.subr.mxu1 %v644_v0 }
  0x3e   :  { %520 = vmatpush3.msra.mxu0 %v41_v18 }
  0xde   :  { %v149_v20 = vpop.f32.mrf.mxu0 }
  0xdf   :  { %v150_v21 = vadd.f32 %v392_v19, %v149_v20 }
  0xe0   :  { %v453_v22 = vpop.f32.mrf.mxu0 }
  0xe1   :  { %566 = vtanh.f32 %v150_v21 }
  0xee   :  { %v567_v23 = vpop.eup %566 }
  0xef   :  { %487 = vmatmul.mubr.f32.vlgmr.msra.gmra.mxu1 %v567_v23 }
  0xf0   :  { %556 = vmatprep.mubr.msk.f32.mxu1 %vm645_vm0, %v644_v0  ;;  %525 = vmatpush3.msra.mxu1 %v73_v24 }
  0xf1   :  { %526 = vmatprep.subr.mxu1 %v644_v0 }
  0xf2   :  { %527 = vmatpush3.msra.mxu1 %v72_v25 }
  0xf3   :  { %528 = vmatprep.subr.mxu1 %v644_v0 }
  0xf4   :  { %529 = vmatpush3.msra.mxu1 %v71_v26 }
  0xf5   :  { %530 = vmatprep.subr.mxu1 %v644_v0 }
  0xf6   :  { %531 = vmatpush3.msra.mxu1 %v70_v27 }
  0xf7   :  { %532 = vmatprep.subr.mxu1 %v644_v0 }
  0xf8   :  { %533 = vmatpush3.msra.mxu1 %v69_v28 }
  0xf9   :  { %534 = vmatprep.subr.mxu1 %v644_v0 }
  0xfa   :  { %535 = vmatpush3.msra.mxu1 %v68_v29 }
  0xfb   :  { %536 = vmatprep.subr.mxu1 %v644_v0 }
  0xfc   :  { %537 = vmatpush3.msra.mxu1 %v67_v30 }
  0xfd   :  { %538 = vmatprep.subr.mxu1 %v644_v0 }
  0xfe   :  { %539 = vmatpush3.msra.mxu1 %v66_v36 }
  0xff   :  { %540 = vmatprep.subr.mxu1 %v644_v0 }
 0x100   :  { %541 = vmatpush3.msra.mxu1 %v65_v37 }
 0x101   :  { %542 = vmatprep.subr.mxu1 %v644_v0 }
 0x102   :  { %543 = vmatpush3.msra.mxu1 %v64_v38 }
 0x103   :  { %544 = vmatprep.subr.mxu1 %v644_v0 }
 0x104   :  { %545 = vmatpush3.msra.mxu1 %v63_v39 }
 0x105   :  { %546 = vmatprep.subr.mxu1 %v644_v0 }
 0x106   :  { %547 = vmatpush3.msra.mxu1 %v62_v40 }
 0x107   :  { %548 = vmatprep.subr.mxu1 %v644_v0 }
 0x108   :  { %549 = vmatpush3.msra.mxu1 %v61_v41 }
 0x109   :  { %550 = vmatprep.subr.mxu1 %v644_v0 }
 0x10a   :  { %551 = vmatpush3.msra.mxu1 %v60_v42 }
 0x10b   :  { %552 = vmatprep.subr.mxu1 %v644_v0 }
 0x10c   :  { %553 = vmatpush3.msra.mxu1 %v59_v43 }
 0x10d   :  { %554 = vmatprep.subr.mxu1 %v644_v0 }
 0x10e   :  { %555 = vmatpush3.msra.mxu1 %v58_v44 }
 0x1af   :  { %v224_v32 = vpop.f32.mrf.mxu1 }
 0x1b0   :  { %v225_v33 = vadd.f32 %v394_v31, %v224_v32 }
 0x1b1   :  { %v488_v34 = vpop.f32.mrf.mxu1 }
 0x1b2   :  { %568 = vtanh.f32 %v225_v33 }
 0x1bf   :  { %v569_v35 = vpop.eup %568 }
 0x1c0   :  { %522 = vmatmul.mubr.f32.vlgmr.msra.gmra.mxu0 %v569_v35 }
 0x280   :  { %v295_v45 = vpop.f32.mrf.mxu0 }
 0x281   :  { %v296_v46 = vadd.f32 %v394_v31, %v295_v45 }
 0x282   :  { %v523_v47 = vpop.f32.mrf.mxu0 }
 0x283   :  { %570 = vtanh.f32 %v296_v46 }
 0x290   :  { %v571_v48 = vpop.eup %570 }
 0x291   :  { %557 = vmatmul.mubr.f32.vlgmr.msra.gmra.mxu1 %v571_v48 }
 0x351   :  { %v370_v50 = vpop.f32.mrf.mxu1 }
 0x352   :  { %v371_v51 = vadd.f32 %v395_v49, %v370_v50 }
 0x353   :  { %v558_v52 = vpop.f32.mrf.mxu1 }
 0x354   :  { %572 = vtanh.f32 %v371_v51 }
 0x361   :  { %v573_v53 = vpop.eup %572 }
 0x362   :  { %375 = vst [vmem:[#allocation7] sm:$0xff] %v573_v53 }
 0x363   :  { %625 = shalt.err (!%p622_p0)
}
 0x364   :  { %385 = dma.vmem_to_hbm [thread:$0]  %s383_s1, 128, %s730_s2, [#allocation4]  }
 0x365   :  { %638 = dma.done.wait [#allocation4], 128  }
 0x366   :  { %639 = vsyncadd [#allocation4], 4294967168 }
 0x367   :  { %389 = vsyncpa [#allocation3], 1 }
 0x368   :  { %390 = vsyncpa [#allocation6], 1 }
 0x369   :  { %391 = vsyncpa [#allocation4], 1 }

</bundles_post_ra>
